<compile_context>
chip_gen: v7x
topology: tpu7x:2x2x1
jax: 0.10.0
libtpu: 0.0.40
codegen_flags: <defaults>
</compile_context>

<pallas_src>
import functools

import jax
import jax.numpy as jnp
from jax.experimental import pallas as pl
from jax.experimental.pallas import tpu as pltpu


# ------------------------- kernel -------------------------

def _ln_rows_kernel(x_ref, g_ref, b_ref, o_ref, *, d_valid, d_pad):
    # x_ref: (Bb, R, D_pad) tile of rows; g_ref/b_ref: (Bb, 1, D_pad) gain/bias.
    x = x_ref[...].astype(jnp.float32)
    g = g_ref[...].astype(jnp.float32)            # broadcasts over rows
    b = b_ref[...].astype(jnp.float32)

    if d_valid == d_pad:
        mu = jnp.mean(x, axis=-1, keepdims=True)
        xc = x - mu                               # x dead after this point
        s = jnp.mean(xc * xc, axis=-1, keepdims=True)
    else:
        # Last dim was zero-padded to a multiple of 128 in the wrapper; compute
        # the statistics over the true d_valid lanes only (pad lanes masked).
        lane = jax.lax.broadcasted_iota(jnp.int32, x.shape, x.ndim - 1)
        valid = lane < d_valid
        inv_d = jnp.float32(1.0 / d_valid)
        mu = jnp.sum(jnp.where(valid, x, 0.0), axis=-1, keepdims=True) * inv_d
        xc = jnp.where(valid, x - mu, 0.0)
        s = jnp.sum(xc * xc, axis=-1, keepdims=True) * inv_d

    # NOTE: matches PyTorch module exactly — eps is added OUTSIDE the rsqrt.
    o_ref[...] = (xc * (1e-5 + jax.lax.rsqrt(s)) * g + b).astype(o_ref.dtype)


# ------------------------- tiling helpers -------------------------

def _vmem_budget(itemsize):
    """(target x-block bytes, vmem_limit_bytes), generation-aware."""
    try:
        cap = int(getattr(pltpu.get_tpu_info(), "vmem_capacity_bytes", 128 << 20))
    except Exception:
        cap = 128 << 20
    if cap <= (64 << 20):          # v7x: 64 MiB physical VMEM per TensorCore
        limit, max_block = 40 << 20, 4 << 20
    else:                          # v5e / v6e: 128 MiB physical VMEM
        limit, max_block = 64 << 20, 8 << 20
    # footprint ~= 2x double-buffered x + 2x double-buffered out
    #              + ~2 full-tile f32 temporaries (cast + centered x)
    denom = 4 + 2 * max(1, 4 // itemsize)
    block = min(max_block, int(limit * 0.75) // denom)
    return max(block, 128 * 1024), limit


def _choose_tiles(B, T, D, itemsize, target_block_bytes):
    """Return (Bb, R): x blocks are (Bb, R, D), grid = (cdiv(B,Bb), cdiv(T,R))."""
    # Sublane packing per dtype: f32 -> 8, bf16/f16 -> 16, int8/fp8 -> 32.
    sub = {4: 8, 2: 16, 1: 32}.get(itemsize, 8)
    rows = max(sub, target_block_bytes // max(1, D * itemsize))

    if rows < T:
        # Tile the T axis; one batch element per block.
        return 1, max(sub, (rows // sub) * sub)

    # A full (T, D) slab per batch fits the budget: fold batch into the block.
    Bb = max(1, min(B, rows // max(1, T)))
    if B >= 2:
        # Keep >= 2 grid steps along the (parallel) batch axis for v7x's 2 TCs.
        Bb = min(Bb, -(-B // 2))
        return Bb, T
    # B == 1: keep >= 2 parallel steps by splitting T instead, when possible.
    if T >= 2 * sub:
        R = max(sub, (((T + 1) // 2) // sub) * sub)
        if R < T:
            return 1, R
    return 1, T


def _layernorm_rows(x, g2, b2):
    """Streaming LN. x: (B, T, D); g2/b2: (B, D) f32 per-batch gain/bias."""
    B, T, D = x.shape
    itemsize = jnp.dtype(x.dtype).itemsize

    # Keep the streamed blocks lane-dense: pad D up to a multiple of 128 and
    # slice back after the pallas_call (stats are masked to the true D).
    D_pad = ((D + 127) // 128) * 128
    if D_pad != D:
        x_p = jnp.pad(x, ((0, 0), (0, 0), (0, D_pad - D)))
        g_p = jnp.pad(g2, ((0, 0), (0, D_pad - D)))
        b_p = jnp.pad(b2, ((0, 0), (0, D_pad - D)))
    else:
        x_p, g_p, b_p = x, g2, b2
    g3 = g_p.reshape(B, 1, D_pad)
    b3 = b_p.reshape(B, 1, D_pad)

    target_block, vmem_limit = _vmem_budget(itemsize)
    Bb, R = _choose_tiles(B, T, D_pad, itemsize, target_block)
    grid = (pl.cdiv(B, Bb), pl.cdiv(T, R))

    out = pl.pallas_call(
        functools.partial(_ln_rows_kernel, d_valid=D, d_pad=D_pad),
        out_shape=jax.ShapeDtypeStruct((B, T, D_pad), x.dtype),
        grid=grid,
        in_specs=[
            pl.BlockSpec((Bb, R, D_pad), lambda i, j: (i, j, 0)),
            pl.BlockSpec((Bb, 1, D_pad), lambda i, j: (i, 0, 0)),
            pl.BlockSpec((Bb, 1, D_pad), lambda i, j: (i, 0, 0)),
        ],
        out_specs=pl.BlockSpec((Bb, R, D_pad), lambda i, j: (i, j, 0)),
        compiler_params=pltpu.CompilerParams(
            dimension_semantics=("parallel", "parallel"),
            vmem_limit_bytes=vmem_limit,
        ),
    )(x_p, g3, b3)

    if D_pad != D:
        out = out[..., :D]
    return out


# ------------------------- wrappers -------------------------

@jax.jit
def layernorm_conditional(x, class_cond, w, wb):
    """Conditional LayerNorm. x: (B, T, D), class_cond: (B, C), w/wb: (D, C)."""
    cc = class_cond.astype(jnp.float32)
    dnums = (((1,), (1,)), ((), ()))  # contract C of cc with C of w — no transpose
    # One batched (B,C)x(C,D) matmul, hoisted out of the kernel (f32 accumulation).
    g = 1.0 + jax.lax.dot_general(cc, w.astype(jnp.float32), dnums,
                                  preferred_element_type=jnp.float32)      # (B, D)
    b = jax.lax.dot_general(cc, wb.astype(jnp.float32), dnums,
                            preferred_element_type=jnp.float32)            # (B, D)
    return _layernorm_rows(x, g, b)


@jax.jit
def layernorm_unconditional(x, g, b):
    """Unconditional LayerNorm. x: (B, T, D), g/b: (D,)."""
    B, _, D = x.shape
    g2 = jnp.broadcast_to(g.astype(jnp.float32).reshape(1, D), (B, D))
    b2 = jnp.broadcast_to(b.astype(jnp.float32).reshape(1, D), (B, D))
    return _layernorm_rows(x, g2, b2)


# ------------------------- reference (pure JAX) -------------------------

def _ref_forward(x, g, b):
    xf = x.astype(jnp.float32)
    mu = xf.mean(axis=-1, keepdims=True)
    s = jnp.square(xf - mu).mean(axis=-1, keepdims=True)
    xf = (xf - mu) * (1e-5 + jax.lax.rsqrt(s))
    return (xf * g + b).astype(x.dtype)


def _ref_conditional(x, class_cond, w, wb):
    g = 1.0 + class_cond @ w.T          # (B, D)
    b = class_cond @ wb.T               # (B, D)
    return _ref_forward(x, g[:, None, :], b[:, None, :])


def _ref_unconditional(x, g, b):
    return _ref_forward(x, g.reshape(1, 1, -1), b.reshape(1, 1, -1))


# ------------------------- main -------------------------

if __name__ == "__main__":
    B, T, D, C = 2, 8, 128, 16   # batch, seq (temporal), embd_dim, class_cond_dim

    key = jax.random.PRNGKey(0)
    kx, kc, kwb, kx2, kc2, kwb2 = jax.random.split(key, 6)

    x = jax.random.normal(kx, (B, T, D), dtype=jnp.float32)
    class_cond = jax.random.normal(kc, (B, C), dtype=jnp.float32)

    # Parameter init (deterministic):
    #   w  = constant 1/sqrt(class_cond_dim)   (nn.init.constant_)
    #   wb = deterministic random (stands in for default nn.Linear init)
    w = jnp.full((D, C), 1.0 / jnp.sqrt(jnp.float32(C)), dtype=jnp.float32)
    wb = 0.1 * jax.random.normal(kwb, (D, C), dtype=jnp.float32)

    # conditional path
    out_cond = jax.block_until_ready(layernorm_conditional(x, class_cond, w, wb))
    ref_cond = _ref_conditional(x, class_cond, w, wb)
    assert jnp.allclose(out_cond, ref_cond, atol=1e-4, rtol=1e-4), "conditional mismatch"

    # unconditional path (g = ones, b = zeros as in __init__)
    g = jnp.ones((D,), dtype=jnp.float32)
    b = jnp.zeros((D,), dtype=jnp.float32)
    out_uncond = jax.block_until_ready(layernorm_unconditional(x, g, b))
    ref_uncond = _ref_unconditional(x, g, b)
    assert jnp.allclose(out_uncond, ref_uncond, atol=1e-4, rtol=1e-4), "unconditional mismatch"

    # Non-multiple-of-128 embedding dim exercises the lane-padding + masked-stats path.
    D2 = 96
    x2 = jax.random.normal(kx2, (B, T, D2), dtype=jnp.float32)
    cc2 = jax.random.normal(kc2, (B, C), dtype=jnp.float32)
    w2 = jnp.full((D2, C), 1.0 / jnp.sqrt(jnp.float32(C)), dtype=jnp.float32)
    wb2 = 0.1 * jax.random.normal(kwb2, (D2, C), dtype=jnp.float32)
    out2 = jax.block_until_ready(layernorm_conditional(x2, cc2, w2, wb2))
    ref2 = _ref_conditional(x2, cc2, w2, wb2)
    assert jnp.allclose(out2, ref2, atol=1e-4, rtol=1e-4), "padded-D conditional mismatch"

    print("KERNEL_OK")
</pallas_src>

<mosaic_0001>
module attributes {stable_mosaic.version = 11 : i64} {
  func.func @_ln_rows_kernel(%arg0: i32, %arg1: i32, %arg2: memref<1x8x128xf32, #tpu.memory_space<vmem>>, %arg3: memref<1x1x128xf32, #tpu.memory_space<vmem>>, %arg4: memref<1x1x128xf32, #tpu.memory_space<vmem>>, %arg5: memref<1x8x128xf32, #tpu.memory_space<vmem>>) attributes {dimension_semantics = [#tpu.dimension_semantics<parallel>, #tpu.dimension_semantics<parallel>], iteration_bounds = array<i64: 2, 1>, scalar_prefetch = 0 : i64, scratch_operands = 0 : i64, tpu.core_type = #tpu.core_type<tc>, window_params = [{transform_indices = @transform_0, window_bounds = array<i64: 1, 8, 128>}, {transform_indices = @transform_1, window_bounds = array<i64: 1, 1, 128>}, {transform_indices = @transform_2, window_bounds = array<i64: 1, 1, 128>}, {transform_indices = @transform_3, window_bounds = array<i64: 1, 8, 128>}]} {
    %c0 = arith.constant 0 : index
    %c0_0 = arith.constant 0 : index
    %c0_1 = arith.constant 0 : index
    %0 = vector.load %arg2[%c0, %c0_0, %c0_1] : memref<1x8x128xf32, #tpu.memory_space<vmem>>, vector<1x8x128xf32>
    %c0_2 = arith.constant 0 : index
    %c0_3 = arith.constant 0 : index
    %c0_4 = arith.constant 0 : index
    %1 = vector.load %arg3[%c0_2, %c0_3, %c0_4] : memref<1x1x128xf32, #tpu.memory_space<vmem>>, vector<1x1x128xf32>
    %c0_5 = arith.constant 0 : index
    %c0_6 = arith.constant 0 : index
    %c0_7 = arith.constant 0 : index
    %2 = vector.load %arg4[%c0_5, %c0_6, %c0_7] : memref<1x1x128xf32, #tpu.memory_space<vmem>>, vector<1x1x128xf32>
    %cst = arith.constant dense<0.000000e+00> : vector<1x8xf32>
    %3 = vector.multi_reduction <add>, %0, %cst [2] : vector<1x8x128xf32> to vector<1x8xf32>
    %4 = vector.shape_cast %3 : vector<1x8xf32> to vector<1x8x1xf32>
    %cst_8 = arith.constant 1.280000e+02 : f32
    %5 = vector.broadcast %cst_8 : f32 to vector<1x8x1xf32>
    %6 = arith.divf %4, %5 : vector<1x8x1xf32>
    %7 = vector.broadcast %6 : vector<1x8x1xf32> to vector<1x8x128xf32>
    %8 = arith.subf %0, %7 : vector<1x8x128xf32>
    %9 = arith.mulf %8, %8 : vector<1x8x128xf32>
    %cst_9 = arith.constant dense<0.000000e+00> : vector<1x8xf32>
    %10 = vector.multi_reduction <add>, %9, %cst_9 [2] : vector<1x8x128xf32> to vector<1x8xf32>
    %11 = vector.shape_cast %10 : vector<1x8xf32> to vector<1x8x1xf32>
    %cst_10 = arith.constant 1.280000e+02 : f32
    %12 = vector.broadcast %cst_10 : f32 to vector<1x8x1xf32>
    %13 = arith.divf %11, %12 : vector<1x8x1xf32>
    %14 = math.rsqrt %13 : vector<1x8x1xf32>
    %cst_11 = arith.constant 9.99999974E-6 : f32
    %15 = vector.broadcast %cst_11 : f32 to vector<1x8x1xf32>
    %16 = arith.addf %15, %14 : vector<1x8x1xf32>
    %17 = vector.broadcast %16 : vector<1x8x1xf32> to vector<1x8x128xf32>
    %18 = arith.mulf %8, %17 : vector<1x8x128xf32>
    %19 = vector.broadcast %1 : vector<1x1x128xf32> to vector<1x8x128xf32>
    %20 = arith.mulf %18, %19 : vector<1x8x128xf32>
    %21 = vector.broadcast %2 : vector<1x1x128xf32> to vector<1x8x128xf32>
    %22 = arith.addf %20, %21 : vector<1x8x128xf32>
    %c0_12 = arith.constant 0 : index
    %c0_13 = arith.constant 0 : index
    %c0_14 = arith.constant 0 : index
    %23 = vector.load %arg5[%c0_12, %c0_13, %c0_14] : memref<1x8x128xf32, #tpu.memory_space<vmem>>, vector<1x8x128xf32>
    tpu.vector_store %arg5[%c0_12, %c0_13, %c0_14], %22 {strides = array<i32>} : memref<1x8x128xf32, #tpu.memory_space<vmem>>, vector<1x8x128xf32>,
    return
  }
  func.func @transform_0(%arg0: i32, %arg1: i32) -> (i32, i32, i32) {
    %c0_i32 = arith.constant 0 : i32
    %c0_i32_0 = arith.constant 0 : i32
    return %arg0, %arg1, %c0_i32 : i32, i32, i32
  }
  func.func @transform_1(%arg0: i32, %arg1: i32) -> (i32, i32, i32) {
    %c0_i32 = arith.constant 0 : i32
    %c0_i32_0 = arith.constant 0 : i32
    %c0_i32_1 = arith.constant 0 : i32
    return %arg0, %c0_i32, %c0_i32_0 : i32, i32, i32
  }
  func.func @transform_2(%arg0: i32, %arg1: i32) -> (i32, i32, i32) {
    %c0_i32 = arith.constant 0 : i32
    %c0_i32_0 = arith.constant 0 : i32
    %c0_i32_1 = arith.constant 0 : i32
    return %arg0, %c0_i32, %c0_i32_0 : i32, i32, i32
  }
  func.func @transform_3(%arg0: i32, %arg1: i32) -> (i32, i32, i32) {
    %c0_i32 = arith.constant 0 : i32
    %c0_i32_0 = arith.constant 0 : i32
    return %arg0, %arg1, %c0_i32 : i32, i32, i32
  }
}

</mosaic_0001>

<bundles_post_ra>
// kernel: layernorm_conditional.1
= control target key start
LH: loop header
LB: loop body
LE: loop exit
PB: predicated region body
PF: predicated region fallthrough
CT: control target
= control target key end

     0   :  { %s975_s0 = inlined_call_operand.hbm [shape: f32[2,8,128], index: 0, kind: input, shape index: {}]   ;;  %s976_s1 = inlined_call_operand.hbm [shape: f32[2,1,128], index: 1, kind: input, shape index: {}]   ;;  %s977_s2 = inlined_call_operand.hbm [shape: f32[2,1,128], index: 2, kind: input, shape index: {}]   ;;  %s978_s3 = inlined_call_operand.hbm [shape: f32[2,8,128], index: 3, kind: output, shape index: {}]  }
   0x1   :  { %984 = sst [smem:[#allocation15_spill]] %s976_s1 }
   0x2   :  { %8 = vsyncpa [#allocation3], 0 }
   0x3   :  { %10 = vsyncpa [#allocation3 + $0x1], 0 }
   0x4   :  { %11 = vsyncpa [#allocation6], 0 }
   0x5   :  { %13 = vsyncpa [#allocation6 + $0x1], 0 }
   0x6   :  { %14 = vsyncpa [#allocation4], 0 }
   0x7   :  { %16 = vsyncpa [#allocation4 + $0x1], 0  ;;  %s723_s12 = smov 0   ;;  %s725_s13 = smov 0  }
   0x8   :  { %s727_s14 = smov 0   ;;  %s729_s15 = smov 0  }
   0x9   :  { %s731_s16 = smov 0   ;;  %s733_s17 = smov 0  }
   0xa LB: > { %985 = sst [smem:[#allocation12_spill]] %s693_s16  ;;  %s754_s18 = sadd.s32 4294967295, %s697_s17   ;;  %s697_s17 = sphi %s733_s17, %s22_s17   ;;  %s693_s16 = sphi %s731_s16, %s1004_s16   ;;  %s689_s15 = sphi %s729_s15, %s1003_s15   ;;  %s685_s14 = sphi %s727_s14, %s1007_s14   ;;  %s681_s13 = sphi %s725_s13, %s1006_s13   ;;  %s677_s12 = sphi %s723_s12, %s1005_s12  }
   0xb   : > { %s431_s19 = sadd.s32 4294967294, %s697_s17   ;;  %s34_s20 = sadd.s32 1, %s693_s16 }
   0xc   : > { %s43_s21 = sadd.s32 1, %s685_s14  ;;  %p36_p0 = scmp.ge.s32.totalorder %s34_s20, 2 }
   0xd   : > { %p50_p1 = scmp.ne.s32.totalorder %s685_s14, %s681_s13  ;;  %p51_p2 = scmp.eq.s32.totalorder %s697_s17, 0 }
   0xe   : > { %p56_p3 = scmp.ne.s32.totalorder %s681_s13, %s677_s12  ;;  %s1009_s20 = smov (%p36_p0, %s34_s20), 0 }
   0xf   : > { %986 = sst [smem:[#allocation13_spill]] %s1009_s20  ;;  %p766_p4 = por %p51_p2, %p50_p1 }
  0x10   : > { %p57_p5 = scmp.eq.s32.totalorder %s754_s18, 0  ;;  %s38_s23 = ssub.s32 %s693_s16, %s1009_s20 }
  0x11   : > { %p134_p6 = scmp.eq.s32.totalorder %s754_s18, 1  ;;  %p41_p7 = scmp.eq.s32.totalorder %s38_s23, 0 }
  0x12   : > { %p774_p8 = por %p57_p5, %p56_p3  ;;  %p140_p10 = scmp.eq.s32.totalorder %s431_s19, 1 }
  0x13   : > { %p778_p9 = por %p134_p6, %p50_p1  ;;  %p469_p13 = scmp.lt.s32.totalorder %s697_s17, 2 }
  0x14   : > { %s988_s24 = scalar_select %p774_p8, 1, 0 }
  0x15   : > { %s989_s25 = scalar_select %p778_p9, 1, 0 }
  0x16   : > { %s783_s26 = scalar_select %p41_p7, %s685_s14, %s43_s21  }
  0x17   : > { %p785_p11 = por %p140_p10, %p56_p3  ;;  %s792_s28 = sand.u32 1, %s685_s14  }
  0x18   : > { %990 = sst [smem:[#allocation14_spill]] %s783_s26  ;;  %s179_s29 = sand.u32 1, %s697_s17  }
  0x19   : > { %s991_s27 = scalar_select %p785_p11, 1, 0 }
  0x1a   : > { %p797_p0 = pnand %p469_p13, %p766_p4  ;;  %s436_s4 = sshll.u32 %s693_s16, 4 }
  0x1b   : > { %s182_s5 = scalar_lea.vmem [#allocation5], %s792_s28  ;;  %s993_s1 = sld [smem:[#allocation15_spill]] }
  0x1c   : > { %s992_s30 = scalar_select %p797_p0, 1, 0 }
  0x1d   : > { %s189_s6 = sshll.u32 %s182_s5, 4  ;;  %s813_s19 = scalar_lea.hbm %s977_s2, %s436_s4  ;;  %s808_s6 = int_to_ptr.vmem [resolvable:$true] %s189_s6 }
  0x1e   : > { %s815_s21 = scalar_lea.sflag [#allocation6], %s179_s29  ;;  %p821_p2 = pneg %p797_p0 }
  0x21   : > { %s806_s9 = scalar_lea.hbm %s993_s1, %s436_s4  ;;  %s526_s8 = scalar_lea.hbm %s993_s1, 32 }
  0x22   : > { %s521_s22 = scalar_lea.hbm %s806_s9, 16  ;;  %p527_p5 = scmp.lt.u32.totalorder %s806_s9, %s993_s1 }
  0x23   : > { %p522_p1 = scmp.ne.s32.totalorder %s806_s9, %s521_s22  ;;  %p528_p6 = scmp.lt.u32.totalorder %s526_s8, %s521_s22 }
  0x24   : > { %p530_p10 = scmp.lt.u32.totalorder %s521_s22, %s806_s9 }
  0x25   : > { %p524_p3 = pnand %p821_p2, %p522_p1  ;;  %p529_p7 = por %p528_p6, %p527_p5 }
  0x27   : > { %p525_p4 = pneg %p524_p3  ;;  %p531_p13 = por %p530_p10, %p529_p7 }
  0x29   : > { %p532_p12 = pnand %p531_p13, %p525_p4 }
  0x2b   : > { %535 = shalt.err (!%p532_p12)
}
  0x2c   : > { %s536_s29 = scalar_lea.vmem %s808_s6, 16  ;;  %s699_s11 = smov [#allocation5]  }
  0x2d   : > { %p537_p1 = scmp.ne.s32.totalorder %s808_s6, %s536_s29  ;;  %s541_s5 = sshll.u32 %s699_s11, 4  ;;  %s542_s5 = int_to_ptr.vmem [resolvable:$false] %s541_s5 }
  0x2e   : > { %s543_s7 = scalar_lea.vmem %s542_s5, 32  ;;  %p544_p9 = scmp.lt.s32.totalorder %s808_s6, %s542_s5 }
  0x2f   : > { %p539_p3 = pnand %p537_p1, %p821_p2  ;;  %p545_p8 = scmp.lt.s32.totalorder %s543_s7, %s536_s29 }
  0x31   : > { %p540_p11 = pneg %p539_p3  ;;  %p546_p5 = por %p545_p8, %p544_p9 }
  0x33   : > { %p547_p6 = pnand %p546_p5, %p540_p11 }
  0x35   : > { %550 = shalt.err (!%p547_p6)
}
  0x36   : > { %461 = dma.hbm_to_vmem [thread:$0]  (!%p797_p0), %s806_s9, 16, %s808_s6, %s815_s21  }
  0x37   : > { %p438_p12 = scmp.ge.s32.totalorder %s697_s17, 1  ;;  %p211_p4 = scmp.lt.s32.totalorder %s697_s17, 3 }
  0x38   : > { %s434_s8 = sshll.u32 %s792_s28, 3  ;;  %s435_s10 = sshll.u32 %s693_s16, 7 }
  0x39   : > { %p847_p7 = pnand %p438_p12, %p211_p4  ;;  %s856_s11 = scalar_lea.hbm %s975_s0, %s435_s10 }
  0x3a   : > { %s164_s5 = scalar_lea.vmem [#allocation2], %s434_s8  ;;  %s199_s6 = scalar_lea.vmem [#allocation7], %s792_s28 }
  0x3b   : > { %s995_s22 = scalar_select %p847_p7, 1, 0 }
  0x3c   : > { %s172_s7 = sshll.u32 %s164_s5, 4  ;;  %s861_s9 = sshll.u32 %s199_s6, 4  ;;  %s858_s7 = int_to_ptr.vmem [resolvable:$true] %s172_s7  ;;  %s207_s9 = int_to_ptr.vmem [resolvable:$true] %s861_s9 }
  0x3d   : > { %s161_s1 = scalar_lea.sflag [#allocation3], %s792_s28  ;;  %s551_s20 = scalar_lea.hbm %s856_s11, 128 }
  0x3e   : > { %p552_p8 = scmp.ne.s32.totalorder %s856_s11, %s551_s20  ;;  %s556_s29 = scalar_lea.hbm %s975_s0, 256 }
  0x3f   : > { %p557_p10 = scmp.lt.u32.totalorder %s856_s11, %s975_s0  ;;  %p558_p13 = scmp.lt.u32.totalorder %s556_s29, %s551_s20 }
  0x40   : > { %p554_p9 = pnand %p552_p8, %p821_p2  ;;  %p560_p3 = scmp.lt.u32.totalorder %s551_s20, %s856_s11 }
  0x41   : > { %p559_p1 = por %p558_p13, %p557_p10 }
  0x42   : > { %p555_p11 = pneg %p554_p9 }
  0x43   : > { %p561_p5 = por %p560_p3, %p559_p1 }
  0x45   : > { %p562_p6 = pnand %p561_p5, %p555_p11 }
  0x47   : > { %565 = shalt.err (!%p562_p6)
}
  0x48   : > { %s566_s28 = scalar_lea.vmem %s858_s7, 128  ;;  %s700_s8 = smov [#allocation2]  }
  0x49   : > { %p567_p12 = scmp.ne.s32.totalorder %s858_s7, %s566_s28  ;;  %s571_s5 = sshll.u32 %s700_s8, 4  ;;  %s572_s5 = int_to_ptr.vmem [resolvable:$false] %s571_s5 }
  0x4a   : > { %s573_s16 = scalar_lea.vmem %s572_s5, 256  ;;  %p574_p9 = scmp.lt.s32.totalorder %s858_s7, %s572_s5 }
  0x4b   : > { %p569_p4 = pnand %p567_p12, %p821_p2  ;;  %p575_p7 = scmp.lt.s32.totalorder %s573_s16, %s566_s28 }
  0x4d   : > { %p570_p8 = pneg %p569_p4  ;;  %p576_p10 = por %p575_p7, %p574_p9 }
  0x4f   : > { %p577_p13 = pnand %p576_p10, %p570_p8 }
  0x51   : > { %580 = shalt.err (!%p577_p13)
}
  0x52   : > { %458 = dma.hbm_to_vmem [thread:$0]  (!%p797_p0), %s856_s11, 128, %s858_s7, %s161_s1  }
  0x53   : > { %s581_s20 = scalar_lea.hbm %s813_s19, 16  ;;  %s586_s4 = scalar_lea.hbm %s977_s2, 32 }
  0x54   : > { %p582_p11 = scmp.ne.s32.totalorder %s813_s19, %s581_s20  ;;  %p587_p7 = scmp.lt.u32.totalorder %s813_s19, %s977_s2 }
  0x55   : > { %p588_p5 = scmp.lt.u32.totalorder %s586_s4, %s581_s20  ;;  %p590_p12 = scmp.lt.u32.totalorder %s581_s20, %s813_s19 }
  0x56   : > { %p584_p1 = pnand %p582_p11, %p821_p2 }
  0x57   : > { %p589_p6 = por %p588_p5, %p587_p7 }
  0x58   : > { %p585_p3 = pneg %p584_p1 }
  0x59   : > { %p591_p4 = por %p590_p12, %p589_p6 }
  0x5b   : > { %p592_p8 = pnand %p591_p4, %p585_p3 }
  0x5d   : > { %595 = shalt.err (!%p592_p8)
}
  0x5e   : > { %s596_s1 = scalar_lea.vmem %s207_s9, 16  ;;  %s701_s11 = smov [#allocation7]  }
  0x5f   : > { %p597_p9 = scmp.ne.s32.totalorder %s207_s9, %s596_s1  ;;  %s601_s7 = sshll.u32 %s701_s11, 4  ;;  %s602_s7 = int_to_ptr.vmem [resolvable:$false] %s601_s7 }
  0x60   : > { %s603_s28 = scalar_lea.vmem %s602_s7, 32  ;;  %p604_p11 = scmp.lt.s32.totalorder %s207_s9, %s602_s7 }
  0x61   : > { %p599_p10 = pnand %p597_p9, %p821_p2  ;;  %p605_p1 = scmp.lt.s32.totalorder %s603_s28, %s596_s1 }
  0x63   : > { %p600_p13 = pneg %p599_p10  ;;  %p606_p0 = por %p605_p1, %p604_p11 }
  0x65   : > { %p607_p5 = pnand %p606_p0, %p600_p13 }
  0x67   : > { %610 = shalt.err (!%p607_p5)
}
  0x68   : > { %p996_p7 = scmp.ne.s32.totalorder %s992_s30, 0  ;;  %p997_p3 = scmp.ne.s32.totalorder %s995_s22, 0 }
  0x69   : > { %s907_s23 = sand.u32 (!%p997_p3), 1, %s681_s13   ;;  %p998_p2 = scmp.ne.s32.totalorder (!%p997_p3), %s988_s24, 0 }
  0x6a   : > { %464 = dma.hbm_to_vmem [thread:$0]  (!%p996_p7), %s813_s19, 16, %s207_s9, %s815_s21  }
  0x6b   : > { %215 = sbr.rel (%p997_p3) target bundleno = 444 (0x1bc), region = 32  ;;  %s439_s8 = sshll.u32 (!%p997_p3), %s907_s23, 3 }
  0x6c   : > { %s218_s5 = scalar_lea.sflag (!%p997_p3), [#allocation3], %s907_s23  ;;  %s221_s16 = scalar_lea.vmem (!%p997_p3), [#allocation2], %s439_s8 }
  0x72   : > { %664 = dma.done.wait (%p998_p2), %s218_s5, 128  }
  0x73   : > { %666 = vsyncadd (%p998_p2), %s218_s5, 4294967168  ;;  %s226_s30 = sand.u32 1, %s754_s18   ;;  %s229_s21 = scalar_lea.vmem [#allocation5], %s907_s23 }
  0x74   : > { %s227_s19 = scalar_lea.sflag [#allocation6], %s226_s30 }
  0x75   : > { %668 = dma.done.wait (%p998_p2), %s227_s19, 32  }
  0x76   : > { %670 = vsyncadd (%p998_p2), %s227_s19, 4294967264  ;;  %v268_v0 = vld [vmem:[%s221_s16] sm:$0xff]  ;;  %s237_s18 = scalar_lea.vmem [#allocation7], %s907_s23  ;;  %s444_s24 = sshll.u32 %s689_s15, 7 }
  0x77   : > { %271 = vadd.xlane.f32.xlu0 %v268_v0  ;;  %v441_v9 = vld [vmem:[%s229_s21] ss:$0 sm:$0xff]  ;;  %s267_s22 = scalar_lea.vmem [#allocation8], %s439_s8  ;;  %s926_s6 = scalar_lea.hbm %s978_s3, %s444_s24 }
  0x78   : > { %v442_v11 = vld [vmem:[%s237_s18] ss:$0 sm:$0xff]  ;;  %s313_s9 = sshll.u32 %s267_s22, 4  ;;  %s299_s4 = scalar_lea.sflag [#allocation4], %s907_s23  ;;  %s928_s9 = int_to_ptr.vmem [resolvable:$true] %s313_s9 }
  0x79   : > { %s611_s10 = scalar_lea.vmem %s928_s9, 128  ;;  %p999_p6 = scmp.ne.s32.totalorder %s989_s25, 0 }
  0x7a   : > { %p612_p0 = scmp.ne.s32.totalorder %s928_s9, %s611_s10  ;;  %s702_s15 = smov [#allocation8]  }
  0x7b   : > { %s615_s29 = sshll.u32 %s702_s15, 4  ;;  %s616_s29 = int_to_ptr.vmem [resolvable:$false] %s615_s29 }
  0x7c   : > { %p613_p12 = pnand %p612_p0, %p999_p6  ;;  %s617_s1 = scalar_lea.vmem %s616_s29, 256 }
  0x7d   : > { %p618_p8 = scmp.lt.s32.totalorder %s928_s9, %s616_s29  ;;  %p619_p9 = scmp.lt.s32.totalorder %s617_s1, %s611_s10 }
  0x7e   : > { %p614_p4 = pneg %p613_p12 }
  0x7f   : > { %p620_p10 = por %p619_p9, %p618_p8 }
  0x81   : > { %p621_p13 = pnand %p620_p10, %p614_p4 }
 0x104   : > { %v272_v1 = vpop.xlane.xlu0 %271 }
 0x105   : > { %v274_v2 = vmul.f32 0.0078125, %v272_v1 }
 0x107   : > { %v275_v3 = vsub.f32 %v268_v0, %v274_v2 }
 0x109   : > { %v276_v4 = vmul.f32 %v275_v3, %v275_v3 }
 0x10b   : > { %277 = vadd.xlane.f32.xlu0 %v276_v4 }
 0x198   : > { %v278_v5 = vpop.xlane.xlu0 %277 }
 0x199   : > { %v279_v6 = vmul.f32 0.0078125, %v278_v5 }
 0x19b   : > { %519 = vrsqrt.f32 %v279_v6 }
 0x1a5   : > { %v520_v7 = vpop.eup %519 }
 0x1a6   : > { %v281_v8 = vadd.f32 1e-05, %v520_v7 }
 0x1a8   : > { %v282_v10 = vmul.f32 %v281_v8, %v275_v3 }
 0x1aa   : > { %v289_v12 = vmul.f32 %v441_v9, %v282_v10 }
 0x1ac   : > { %v296_v13 = vadd.f32 %v442_v11, %v289_v12 }
 0x1ae   : > { %297 = vst [vmem:[%s267_s22] sm:$0xff] %v296_v13 }
 0x1af   : > { %624 = shalt.err (!%p621_p13)
}
 0x1b0   : > { %s625_s11 = scalar_lea.hbm %s926_s6, 128  ;;  %s629_s23 = scalar_lea.hbm %s978_s3, 256 }
 0x1b1   : > { %p626_p11 = scmp.ne.s32.totalorder %s926_s6, %s625_s11  ;;  %p630_p7 = scmp.lt.u32.totalorder %s926_s6, %s978_s3 }
 0x1b2   : > { %p631_p3 = scmp.lt.u32.totalorder %s629_s23, %s625_s11  ;;  %p633_p0 = scmp.lt.u32.totalorder %s625_s11, %s926_s6 }
 0x1b3   : > { %p627_p1 = pnand %p626_p11, %p999_p6 }
 0x1b4   : > { %p632_p2 = por %p631_p3, %p630_p7 }
 0x1b5   : > { %p628_p5 = pneg %p627_p1 }
 0x1b6   : > { %p634_p12 = por %p633_p0, %p632_p2 }
 0x1b8   : > { %p635_p4 = pnand %p634_p12, %p628_p5 }
 0x1ba   : > { %638 = shalt.err (!%p635_p4)
}
 0x1bb   : > { %453 = dma.vmem_to_hbm [thread:$0]  (%p999_p6), %s928_s9, 128, %s926_s6, %s299_s4  }
 0x1bc PF: > { %s325_s16 = sand.u32 1, %s677_s12   ;;  %p1000_p8 = scmp.ne.s32.totalorder %s991_s27, 0 }
 0x1bd   : > { %p1001_p9 = scmp.ge.s32.totalorder %s697_s17, 2  ;;  %s326_s30 = scalar_lea.sflag [#allocation4], %s325_s16 }
 0x1bf   : > { %p466_p10 = pnand %p1001_p9, %p1000_p8 }
 0x1c1   : > { %672 = dma.done.wait (!%p466_p10), %s326_s30, 128  }
 0x1c2   : > { %674 = vsyncadd (!%p466_p10), %s326_s30, 4294967168  ;;  %s22_s17 = sadd.s32 1, %s697_s17   ;;  %s1002_s25 = sld [smem:[#allocation14_spill]] }
 0x1c3   : > { %p19_p13 = scmp.ge.s32.totalorder %s22_s17, 4   ;;  %s1003_s15 = sld [smem:[#allocation12_spill]] }
 0x1c4   : > { %s1004_s16 = sld [smem:[#allocation13_spill]]  ;;  %s1005_s12 = smov %s681_s13 }
 0x1c5   : > { %s1006_s13 = smov %s685_s14  ;;  %21 = sbr.rel (!%p19_p13) target bundleno = 10 (0xa), region = 101 }
 0x1c8   : > { %s1007_s14 = smov %s1002_s25 }
 0x1cc   :  { %331 = vsyncpa [#allocation3], 1 }
 0x1cd   :  { %333 = vsyncpa [#allocation3 + $0x1], 1 }
 0x1ce   :  { %334 = vsyncpa [#allocation6], 1 }
 0x1cf   :  { %336 = vsyncpa [#allocation6 + $0x1], 1 }
 0x1d0   :  { %337 = vsyncpa [#allocation4], 1 }
 0x1d1   :  { %339 = vsyncpa [#allocation4 + $0x1], 1 }

</bundles_post_ra>
